<compile_context>
chip_gen: v5e
topology: v5e:2x2
jax: 0.10.0
libtpu: 0.0.40
codegen_flags: <defaults>
</compile_context>

<pallas_src>
import jax
import jax.numpy as jnp
from jax.experimental import pallas as pl
from jax.experimental.pallas import tpu as pltpu


def _round_up(v, m):
    return (v + m - 1) // m * m


def _gumbel_mlp_kernel(x_ref, w_ref, b_ref, logits_ref):
    """One batch tile: two tanh hidden layers + linear output head.

    x_ref:      (TB, in_dim)        streamed per grid step
    w_ref:      (3, K_PAD, N_PAD)   packed, zero-padded weight slab (resident)
    b_ref:      (3, N_PAD)          packed, zero-padded biases      (resident)
    logits_ref: (TB, N_PAD)         lane-dense padded logits
    """
    x = x_ref[...]                       # (TB, in_dim) f32
    in_dim = x.shape[1]
    b = b_ref[...]                       # (3, N_PAD)
    n_pad = b.shape[1]

    # Hidden layer 1: tanh(x @ W1 + b1). Padded output columns stay exactly 0
    # because the padded weight columns and bias entries are 0 and tanh(0)=0.
    h = jnp.tanh(
        jnp.dot(x, w_ref[0][:in_dim, :], preferred_element_type=jnp.float32)
        + b[0:1, :])

    # Hidden layer 2: tanh(h1 @ W2 + b2). Zero padding propagates.
    h = jnp.tanh(
        jnp.dot(h, w_ref[1][:n_pad, :], preferred_element_type=jnp.float32)
        + b[1:2, :])

    # Output head (linear), lane-dense (N_PAD multiple of 128).
    logits_ref[...] = (
        jnp.dot(h, w_ref[2][:n_pad, :], preferred_element_type=jnp.float32)
        + b[2:3, :]).astype(logits_ref.dtype)


def gumbel_softmax_mlp_forward(x, params, *, min_temp=1e-6, max_temp=None,
                               batch_tile=128):
    """Forward pass: returns (temperature [1,1] f32, logits [B, out_dim] f32)."""
    b, in_dim = x.shape
    h1 = params["w1"].shape[1]
    h2 = params["w2"].shape[1]
    out_dim = params["w3"].shape[1]

    # ---- pack parameters into two VMEM-resident, lane-aligned slabs --------
    n_pad = _round_up(max(h1, h2, out_dim), 128)          # lane-dense width
    k_pad = max(_round_up(in_dim, 8), n_pad)              # contraction rows

    w_slab = jnp.zeros((3, k_pad, n_pad), jnp.float32)
    w_slab = w_slab.at[0, :in_dim, :h1].set(params["w1"].astype(jnp.float32))
    w_slab = w_slab.at[1, :h1, :h2].set(params["w2"].astype(jnp.float32))
    w_slab = w_slab.at[2, :h2, :out_dim].set(params["w3"].astype(jnp.float32))

    b_pack = jnp.zeros((3, n_pad), jnp.float32)
    b_pack = b_pack.at[0, :h1].set(params["b1"].reshape(-1).astype(jnp.float32))
    b_pack = b_pack.at[1, :h2].set(params["b2"].reshape(-1).astype(jnp.float32))
    b_pack = b_pack.at[2, :out_dim].set(
        params["b3"].reshape(-1).astype(jnp.float32))

    # ---- batch tiling ------------------------------------------------------
    tb = min(batch_tile, _round_up(b, 8))
    b_padded = _round_up(b, tb)
    x_f32 = x.astype(jnp.float32)
    x_pad = x_f32 if b_padded == b else jnp.pad(
        x_f32, ((0, b_padded - b), (0, 0)))
    grid = (b_padded // tb,)

    flops = 2 * b_padded * (in_dim * h1 + h1 * h2 + h2 * out_dim)
    bytes_accessed = 4 * (b_padded * in_dim + 3 * k_pad * n_pad + 3 * n_pad
                          + b_padded * n_pad)

    logits_pad = pl.pallas_call(
        _gumbel_mlp_kernel,
        out_shape=jax.ShapeDtypeStruct((b_padded, n_pad), jnp.float32),
        grid=grid,
        in_specs=[
            # streamed per batch tile (double-buffered by the pipeline)
            pl.BlockSpec((tb, in_dim), lambda i: (i, 0)),
            # resident across the whole grid (constant index_map -> one DMA)
            pl.BlockSpec((3, k_pad, n_pad), lambda i: (0, 0, 0)),
            pl.BlockSpec((3, n_pad), lambda i: (0, 0)),
        ],
        out_specs=pl.BlockSpec((tb, n_pad), lambda i: (i, 0)),
        compiler_params=pltpu.CompilerParams(
            dimension_semantics=("parallel",)),
        cost_estimate=pl.CostEstimate(
            flops=flops,
            transcendentals=b_padded * (h1 + h2),
            bytes_accessed=bytes_accessed),
    )(x_pad, w_slab, b_pack)

    logits = logits_pad[:b, :out_dim]

    # ---- temperature: clamp log_temp then exp ('exp' parameterization) -----
    # Kept outside the kernel on purpose: it is a single scalar EUP op and
    # routing it through padded VMEM tiles only adds DMA latency.
    log_temp = params["log_temp"].astype(jnp.float32)
    if min_temp is not None:
        log_temp = jnp.maximum(log_temp, jnp.log(jnp.float32(min_temp)))
    if max_temp is not None:
        log_temp = jnp.minimum(log_temp, jnp.log(jnp.float32(max_temp)))
    temp = jnp.exp(log_temp)

    return temp, logits


def _xavier_uniform(key, fan_in, fan_out):
    limit = jnp.sqrt(6.0 / (fan_in + fan_out))
    return jax.random.uniform(key, (fan_in, fan_out), jnp.float32,
                              minval=-limit, maxval=limit)


def init_params(key, input_dim, output_dim, hidden_sizes=(32, 32),
                init_temp=1.0):
    """Deterministic parameter init mirroring the torch module's __init__:
    xavier_uniform_ weights, zeros_ biases, log(init_temp) temperature."""
    h1, h2 = hidden_sizes
    k1, k2, k3 = jax.random.split(key, 3)
    return {
        "w1": _xavier_uniform(k1, input_dim, h1),
        "b1": jnp.zeros((1, h1), jnp.float32),
        "w2": _xavier_uniform(k2, h1, h2),
        "b2": jnp.zeros((1, h2), jnp.float32),
        "w3": _xavier_uniform(k3, h2, output_dim),
        "b3": jnp.zeros((1, output_dim), jnp.float32),
        "log_temp": jnp.full((1, 1), jnp.log(jnp.float32(init_temp)),
                             jnp.float32),
    }


def _reference_forward(x, params, min_temp=1e-6, max_temp=None):
    """Pure-JAX reference matching the PyTorch semantics."""
    h = jnp.tanh(x @ params["w1"] + params["b1"])
    h = jnp.tanh(h @ params["w2"] + params["b2"])
    logits = h @ params["w3"] + params["b3"]
    log_temp = params["log_temp"]
    if min_temp is not None:
        log_temp = jnp.maximum(log_temp, jnp.log(jnp.float32(min_temp)))
    if max_temp is not None:
        log_temp = jnp.minimum(log_temp, jnp.log(jnp.float32(max_temp)))
    temp = jnp.exp(log_temp)
    return temp, logits


if __name__ == "__main__":
    batch = 8
    input_dim = 16
    output_dim = 8
    hidden_sizes = (32, 32)

    key = jax.random.PRNGKey(0)
    kx, kp = jax.random.split(key)
    x = jax.random.normal(kx, (batch, input_dim), jnp.float32)
    params = init_params(kp, input_dim, output_dim, hidden_sizes,
                         init_temp=1.0)

    temp, logits = gumbel_softmax_mlp_forward(x, params, min_temp=1e-6)
    temp = jax.block_until_ready(temp)
    logits = jax.block_until_ready(logits)

    ref_temp, ref_logits = _reference_forward(x, params, min_temp=1e-6)
    assert logits.shape == (batch, output_dim)
    assert jnp.allclose(logits, ref_logits, atol=1e-5, rtol=1e-5)
    assert jnp.allclose(temp, ref_temp, atol=1e-6, rtol=1e-6)
    # TODO(synk): sampling from the GumbelSoftmax distribution itself (rsample
    # with Gumbel noise) is outside the module's forward() and not implemented.
    print("KERNEL_OK")
</pallas_src>

<mosaic_0001>
module attributes {stable_mosaic.version = 11 : i64} {
  func.func @_gumbel_mlp_kernel(%arg0: i32, %arg1: memref<8x16xf32, #tpu.memory_space<vmem>>, %arg2: memref<3x128x128xf32, #tpu.memory_space<vmem>>, %arg3: memref<3x128xf32, #tpu.memory_space<vmem>>, %arg4: memref<8x128xf32, #tpu.memory_space<vmem>>) attributes {dimension_semantics = [#tpu.dimension_semantics<parallel>], iteration_bounds = array<i64: 1>, scalar_prefetch = 0 : i64, scratch_operands = 0 : i64, tpu.core_type = #tpu.core_type<tc>, window_params = [{transform_indices = @transform_0, window_bounds = array<i64: 8, 16>}, {pipeline_mode = #tpu.pipeline_mode<synchronous>, transform_indices = @transform_1, window_bounds = array<i64: 3, 128, 128>}, {pipeline_mode = #tpu.pipeline_mode<synchronous>, transform_indices = @transform_2, window_bounds = array<i64: 3, 128>}, {transform_indices = @transform_3, window_bounds = array<i64: 8, 128>}]} {
    %c0 = arith.constant 0 : index
    %c0_0 = arith.constant 0 : index
    %0 = vector.load %arg1[%c0, %c0_0] : memref<8x16xf32, #tpu.memory_space<vmem>>, vector<8x16xf32>
    %c0_1 = arith.constant 0 : index
    %c0_2 = arith.constant 0 : index
    %1 = vector.load %arg3[%c0_1, %c0_2] : memref<3x128xf32, #tpu.memory_space<vmem>>, vector<3x128xf32>
    %c0_3 = arith.constant 0 : index
    %c0_4 = arith.constant 0 : index
    %c0_5 = arith.constant 0 : index
    %2 = vector.load %arg2[%c0_3, %c0_4, %c0_5] : memref<3x128x128xf32, #tpu.memory_space<vmem>>, vector<1x128x128xf32>
    %3 = vector.shape_cast %2 : vector<1x128x128xf32> to vector<128x128xf32>
    %4 = vector.extract_strided_slice %3 {offsets = [0, 0], sizes = [16, 128], strides = [1, 1]} : vector<128x128xf32> to vector<16x128xf32>
    %cst = arith.constant dense<0.000000e+00> : vector<8x128xf32>
    %5 = tpu.matmul %0, %4, %cst {dimension_numbers = #tpu.dot_dimension_numbers<[1], [0], [0], [1], [0, 0, 1, 1], [], []>} : vector<8x16xf32>, vector<16x128xf32>, vector<8x128xf32> -> vector<8x128xf32>
    %6 = vector.extract_strided_slice %1 {offsets = [0, 0], sizes = [1, 128], strides = [1, 1]} : vector<3x128xf32> to vector<1x128xf32>
    %7 = vector.broadcast %6 : vector<1x128xf32> to vector<8x128xf32>
    %8 = arith.addf %5, %7 : vector<8x128xf32>
    %9 = math.tanh %8 : vector<8x128xf32>
    %c1 = arith.constant 1 : index
    %c0_6 = arith.constant 0 : index
    %c0_7 = arith.constant 0 : index
    %10 = vector.load %arg2[%c1, %c0_6, %c0_7] : memref<3x128x128xf32, #tpu.memory_space<vmem>>, vector<1x128x128xf32>
    %11 = vector.shape_cast %10 : vector<1x128x128xf32> to vector<128x128xf32>
    %cst_8 = arith.constant dense<0.000000e+00> : vector<8x128xf32>
    %12 = tpu.matmul %9, %11, %cst_8 {dimension_numbers = #tpu.dot_dimension_numbers<[1], [0], [0], [1], [0, 0, 1, 1], [], []>} : vector<8x128xf32>, vector<128x128xf32>, vector<8x128xf32> -> vector<8x128xf32>
    %13 = vector.extract_strided_slice %1 {offsets = [1, 0], sizes = [1, 128], strides = [1, 1]} : vector<3x128xf32> to vector<1x128xf32>
    %14 = vector.broadcast %13 : vector<1x128xf32> to vector<8x128xf32>
    %15 = arith.addf %12, %14 : vector<8x128xf32>
    %16 = math.tanh %15 : vector<8x128xf32>
    %c2 = arith.constant 2 : index
    %c0_9 = arith.constant 0 : index
    %c0_10 = arith.constant 0 : index
    %17 = vector.load %arg2[%c2, %c0_9, %c0_10] : memref<3x128x128xf32, #tpu.memory_space<vmem>>, vector<1x128x128xf32>
    %18 = vector.shape_cast %17 : vector<1x128x128xf32> to vector<128x128xf32>
    %cst_11 = arith.constant dense<0.000000e+00> : vector<8x128xf32>
    %19 = tpu.matmul %16, %18, %cst_11 {dimension_numbers = #tpu.dot_dimension_numbers<[1], [0], [0], [1], [0, 0, 1, 1], [], []>} : vector<8x128xf32>, vector<128x128xf32>, vector<8x128xf32> -> vector<8x128xf32>
    %20 = vector.extract_strided_slice %1 {offsets = [2, 0], sizes = [1, 128], strides = [1, 1]} : vector<3x128xf32> to vector<1x128xf32>
    %21 = vector.broadcast %20 : vector<1x128xf32> to vector<8x128xf32>
    %22 = arith.addf %19, %21 : vector<8x128xf32>
    %c0_12 = arith.constant 0 : index
    %c0_13 = arith.constant 0 : index
    %23 = vector.load %arg4[%c0_12, %c0_13] : memref<8x128xf32, #tpu.memory_space<vmem>>, vector<8x128xf32>
    tpu.vector_store %arg4[%c0_12, %c0_13], %22 {strides = array<i32>} : memref<8x128xf32, #tpu.memory_space<vmem>>, vector<8x128xf32>,
    return
  }
  func.func @transform_0(%arg0: i32) -> (i32, i32) {
    %c0_i32 = arith.constant 0 : i32
    %c0_i32_0 = arith.constant 0 : i32
    return %arg0, %c0_i32 : i32, i32
  }
  func.func @transform_1(%arg0: i32) -> (i32, i32, i32) {
    %c0_i32 = arith.constant 0 : i32
    %c0_i32_0 = arith.constant 0 : i32
    %c0_i32_1 = arith.constant 0 : i32
    %c0_i32_2 = arith.constant 0 : i32
    return %c0_i32, %c0_i32_0, %c0_i32_1 : i32, i32, i32
  }
  func.func @transform_2(%arg0: i32) -> (i32, i32) {
    %c0_i32 = arith.constant 0 : i32
    %c0_i32_0 = arith.constant 0 : i32
    %c0_i32_1 = arith.constant 0 : i32
    return %c0_i32, %c0_i32_0 : i32, i32
  }
  func.func @transform_3(%arg0: i32) -> (i32, i32) {
    %c0_i32 = arith.constant 0 : i32
    %c0_i32_0 = arith.constant 0 : i32
    return %arg0, %c0_i32 : i32, i32
  }
}

</mosaic_0001>

<bundles_post_ra>
// kernel: tpu_custom_call.1
= control target key start
LH: loop header
LB: loop body
LE: loop exit
PB: predicated region body
PF: predicated region fallthrough
CT: control target
= control target key end

     0   :  { %8 = vsyncpa [#allocation3], 0  ;;  %s335_s0 = inlined_call_operand.hbm [shape: f32[8,16], index: 0, kind: input, shape index: {}]   ;;  %s336_s1 = inlined_call_operand.hbm [shape: f32[3,128,128], index: 1, kind: input, shape index: {}]   ;;  %s337_s2 = inlined_call_operand.hbm [shape: f32[3,128], index: 2, kind: input, shape index: {}]   ;;  %s338_s3 = inlined_call_operand.hbm [shape: f32[8,128], index: 3, kind: output, shape index: {}]  }
   0x1   :  { %9 = vsyncpa [#allocation6], 0  ;;  %s26_s14 = sshll.u32 %s336_s1, 4  ;;  %s27_s14 = int_to_ptr.hbm [resolvable:$true] %s26_s14 }
   0x2   :  { %10 = vsyncpa [#allocation4], 0  ;;  %s297_s15 = smov [#allocation5]   ;;  %s16_s19 = sshll.u32 %s335_s0, 4  ;;  %s17_s19 = int_to_ptr.hbm [resolvable:$true] %s16_s19 }
   0x3   :  { %s28_s16 = sshll.u32 %s297_s15, 4  ;;  %s298_s20 = smov 128   ;;  %s29_s16 = int_to_ptr.vmem [resolvable:$true] %s28_s16 }
   0x4   :  { %s299_s21 = smov 8   ;;  %s300_s22 = smov [#allocation2]  }
   0x5   :  { %34 = dma.hbm_to_vmem [thread:$0]  %s27_s14, 6144, %s29_s16, [#allocation6], %s298_s20, %s298_s20, %s299_s21  }
   0x6   :  { %s18_s23 = sshll.u32 %s300_s22, 4  ;;  %s40_s26 = sshll.u32 %s337_s2, 4  ;;  %s19_s23 = int_to_ptr.vmem [resolvable:$true] %s18_s23  ;;  %s41_s26 = int_to_ptr.hbm [resolvable:$true] %s40_s26 }
   0x7   :  { %21 = dma.hbm_to_vmem [thread:$0]  %s17_s19, 128, %s19_s23, [#allocation3]  }
   0x8   :  { %s301_s1 = smov [#allocation7]  }
   0x9   :  { %s42_s27 = sshll.u32 %s301_s1, 4  ;;  %s43_s27 = int_to_ptr.vmem [resolvable:$true] %s42_s27 }
   0xa   :  { %45 = dma.hbm_to_vmem [thread:$0]  %s41_s26, 64, %s43_s27, [#allocation6]  }
   0xb   :  { %291 = dma.done.wait [#allocation3], 128  }
   0xc   :  { %292 = vsyncadd [#allocation3], 4294967168 }
   0xd   :  { %293 = dma.done.wait [#allocation6], 6208  }
   0xe   :  { %294 = vsyncadd [#allocation6], 4294961088  ;;  %v61_v0 = vld [vmem:[#allocation5 + $0x8] sm:$0xff]  ;;  %v60_v1 = vld [vmem:[#allocation5] sm:$0xff]  ;;  %vm63_vm0 = vcmask 130048   ;;  %s302_s0 = smov [#allocation8]  }
   0xf   :  { %81 = vmatpush.msra.mxu0 %v61_v0  ;;  %v58_v2 = vld [vmem:[#allocation2] sm:$0xff]  ;;  %v103_v4 = vld [vmem:[#allocation5 + $0xf0] sm:$0xff]  ;;  %v102_v5 = vld [vmem:[#allocation5 + $0xe8] sm:$0xff]  ;;  %s171_s2 = sshll.u32 %s302_s0, 4  ;;  %s173_s30 = sshll.u32 %s338_s3, 4  ;;  %s172_s2 = int_to_ptr.vmem [resolvable:$true] %s171_s2  ;;  %s174_s30 = int_to_ptr.hbm [resolvable:$true] %s173_s30 }
  0x10   :  { %v104_v3 = vld [vmem:[#allocation5 + $0xf8] sm:$0xff]  ;;  %v101_v6 = vld [vmem:[#allocation5 + $0xe0] sm:$0xff]  ;;  %v99_v8 = vld [vmem:[#allocation5 + $0xd0] sm:$0xff] }
  0x11   :  { %106 = vmatpush.msra.mxu1 %v104_v3  ;;  %82 = vmatpush.msra.mxu0 %v60_v1  ;;  %v100_v7 = vld [vmem:[#allocation5 + $0xd8] sm:$0xff]  ;;  %v98_v9 = vld [vmem:[#allocation5 + $0xc8] sm:$0xff]  ;;  %v97_v10 = vld [vmem:[#allocation5 + $0xc0] sm:$0xff] }
  0x12   :  { %184 = vmatmul.msk.f32.vlgmr.msra.gmra.mxu0 %vm63_vm0, %v58_v2  ;;  %v96_v11 = vld [vmem:[#allocation5 + $0xb8] sm:$0xff]  ;;  %v95_v12 = vld [vmem:[#allocation5 + $0xb0] sm:$0xff]  ;;  %v94_v13 = vld [vmem:[#allocation5 + $0xa8] sm:$0xff] }
  0x13   :  { %107 = vmatpush.msra.mxu1 %v103_v4  ;;  %v93_v14 = vld [vmem:[#allocation5 + $0xa0] sm:$0xff]  ;;  %v92_v15 = vld [vmem:[#allocation5 + $0x98] sm:$0xff]  ;;  %v91_v16 = vld [vmem:[#allocation5 + $0x90] sm:$0xff] }
  0x14   :  { %v90_v17 = vld [vmem:[#allocation5 + $0x88] sm:$0xff]  ;;  %v89_v18 = vld [vmem:[#allocation5 + $0x80] sm:$0xff]  ;;  %v143_v19 = vld [vmem:[#allocation5 + $0x178] sm:$0xff] }
  0x15   :  { %108 = vmatpush.msra.mxu1 %v102_v5  ;;  %v142_v20 = vld [vmem:[#allocation5 + $0x170] sm:$0xff]  ;;  %145 = vmatpush.msra.mxu2 %v143_v19  ;;  %v141_v21 = vld [vmem:[#allocation5 + $0x168] sm:$0xff]  ;;  %v140_v22 = vld [vmem:[#allocation5 + $0x160] sm:$0xff] }
  0x16   :  { %v139_v23 = vld [vmem:[#allocation5 + $0x158] sm:$0xff]  ;;  %v138_v24 = vld [vmem:[#allocation5 + $0x150] sm:$0xff]  ;;  %v137_v25 = vld [vmem:[#allocation5 + $0x148] sm:$0xff] }
  0x17   :  { %109 = vmatpush.msra.mxu1 %v101_v6  ;;  %146 = vmatpush.msra.mxu2 %v142_v20  ;;  %v136_v26 = vld [vmem:[#allocation5 + $0x140] sm:$0xff]  ;;  %v135_v27 = vld [vmem:[#allocation5 + $0x138] sm:$0xff]  ;;  %v134_v29 = vld [vmem:[#allocation5 + $0x130] sm:$0xff] }
  0x18   :  { %v59_v28 = vld [vmem:[#allocation7] sm:$0x7]  ;;  %v133_v30 = vld [vmem:[#allocation5 + $0x128] sm:$0xff]  ;;  %v131_v36 = vld [vmem:[#allocation5 + $0x118] sm:$0xff] }
  0x19   :  { %110 = vmatpush.msra.mxu1 %v100_v7  ;;  %147 = vmatpush.msra.mxu2 %v141_v21  ;;  %v62_v31 = vperm.slane %v59_v28, 0  ;;  %v132_v35 = vld [vmem:[#allocation5 + $0x120] sm:$0xff]  ;;  %v130_v37 = vld [vmem:[#allocation5 + $0x110] sm:$0xff]  ;;  %v129_v38 = vld [vmem:[#allocation5 + $0x108] sm:$0xff]  ;;  %v105_v40 = vperm.slane %v59_v28, 1  ;;  %v144_v44 = vperm.slane %v59_v28, 2 }
  0x1a   :  { %v128_v39 = vld [vmem:[#allocation5 + $0x100] sm:$0xff] }
  0x1b   :  { %111 = vmatpush.msra.mxu1 %v99_v8  ;;  %148 = vmatpush.msra.mxu2 %v140_v22 }
  0x1d   :  { %112 = vmatpush.msra.mxu1 %v98_v9  ;;  %149 = vmatpush.msra.mxu2 %v139_v23 }
  0x1f   :  { %113 = vmatpush.msra.mxu1 %v97_v10  ;;  %150 = vmatpush.msra.mxu2 %v138_v24 }
  0x21   :  { %114 = vmatpush.msra.mxu1 %v96_v11  ;;  %151 = vmatpush.msra.mxu2 %v137_v25 }
  0x23   :  { %115 = vmatpush.msra.mxu1 %v95_v12  ;;  %152 = vmatpush.msra.mxu2 %v136_v26 }
  0x25   :  { %116 = vmatpush.msra.mxu1 %v94_v13  ;;  %153 = vmatpush.msra.mxu2 %v135_v27 }
  0x27   :  { %117 = vmatpush.msra.mxu1 %v93_v14  ;;  %154 = vmatpush.msra.mxu2 %v134_v29 }
  0x29   :  { %118 = vmatpush.msra.mxu1 %v92_v15  ;;  %155 = vmatpush.msra.mxu2 %v133_v30 }
  0x2b   :  { %119 = vmatpush.msra.mxu1 %v91_v16  ;;  %156 = vmatpush.msra.mxu2 %v132_v35 }
  0x2d   :  { %120 = vmatpush.msra.mxu1 %v90_v17  ;;  %157 = vmatpush.msra.mxu2 %v131_v36 }
  0x2f   :  { %121 = vmatpush.msra.mxu1 %v89_v18  ;;  %158 = vmatpush.msra.mxu2 %v130_v37 }
  0x31   :  { %159 = vmatpush.msra.mxu2 %v129_v38 }
  0x33   :  { %160 = vmatpush.msra.mxu2 %v128_v39 }
  0x8f   :  { %v84_v32 = vpop.f32.mrf.mxu0 }
  0x90   :  { %v85_v33 = vadd.f32 %v84_v32, %v62_v31 }
  0x92   :  { %191 = vtanh.f32 %v85_v33 }
  0x98   :  { %v192_v34 = vpop.eup %191 }
  0x99   :  { %122 = vmatmul.f32.vlgmr.msra.gmra.mxu1 %v192_v34 }
 0x116   :  { %v123_v41 = vpop.f32.mrf.mxu1 }
 0x117   :  { %v124_v42 = vadd.f32 %v123_v41, %v105_v40 }
 0x119   :  { %193 = vtanh.f32 %v124_v42 }
 0x11f   :  { %v194_v43 = vpop.eup %193 }
 0x120   :  { %161 = vmatmul.f32.vlgmr.msra.gmra.mxu2 %v194_v43 }
 0x1a3   :  { %v162_v45 = vpop.f32.mrf.mxu2 }
 0x1a4   :  { %v163_v46 = vadd.f32 %v162_v45, %v144_v44 }
 0x1a6   :  { %165 = vst [vmem:[#allocation8] sm:$0xff] %v163_v46 }
 0x1a7   :  { %176 = dma.vmem_to_hbm [thread:$0]  %s172_s2, 128, %s174_s30, [#allocation4]  }
 0x1a8   :  { %295 = dma.done.wait [#allocation4], 128  }
 0x1a9   :  { %296 = vsyncadd [#allocation4], 4294967168 }
 0x1aa   :  { %181 = vsyncpa [#allocation3], 1 }
 0x1ab   :  { %182 = vsyncpa [#allocation6], 1 }
 0x1ac   :  { %183 = vsyncpa [#allocation4], 1 }

</bundles_post_ra>
